<compile_context>
chip_gen: v5e
topology: v5e:2x2
jax: 0.10.0
libtpu: 0.0.40
codegen_flags: <defaults>
</compile_context>

<pallas_src>
import jax
import jax.numpy as jnp
from jax.experimental import pallas as pl
from jax.experimental.pallas import tpu as pltpu


def _make_kernel(L, G, d_model, d_ff):
    def kernel(x_ref, w1_ref, b1_ref, m_ref, o_ref):
        # x_ref : (G*L, d_model)        rows of flattened (b, i, l)
        # w1_ref: (d_ff, d_model)       W1.weight (untransposed)
        # b1_ref: (1, d_ff)             W1.bias
        # m_ref : (d_ff, d_model*d_ff)  expansion matrix with W2 folded in
        # o_ref : (G, d_model*d_ff)     lane-dense flat output, one row per (b, i)
        x = x_ref[...]

        # scores = x @ W1.T + b1 — one large MXU matmul per grid step.
        scores = jax.lax.dot_general(
            x, w1_ref[...],
            dimension_numbers=(((1,), (1,)), ((), ())),
            preferred_element_type=jnp.float32) + b1_ref[...]        # (G*L, d_ff)

        # Row-wise softmax over d_ff (f32, max-subtracted).
        m = jnp.max(scores, axis=-1, keepdims=True)
        e = jnp.exp(scores - m)
        denom = jnp.sum(e, axis=-1, keepdims=True)
        weights = e * pl.reciprocal(denom, approx=True)               # (G*L, d_ff)

        # Sum the L rows belonging to each (b, i) group (W2 is constant over l).
        wsum = jnp.sum(weights.reshape(G, L, d_ff), axis=1)           # (G, d_ff)

        # mixture[g, d, s] = wsum[g, s] * W2[d, s], produced directly in the flat
        # (d*d_ff + s) layout via one small MXU matmul -> unmasked, 128-lane stores.
        out = jnp.dot(wsum, m_ref[...],
                      preferred_element_type=jnp.float32)             # (G, d_model*d_ff)
        o_ref[...] = out.astype(o_ref.dtype)

    return kernel


def em_feedforward_block(x, w1_weight, w1_bias, w2_weight, *, rows_per_block=None):
    """x: (B, I, L, d_model) with I == L.  Returns (B, I, d_model, d_ff)."""
    B, I, L, d_model = x.shape
    d_ff = w1_weight.shape[0]
    assert I == L, "einsum 'bils,blds->bids' requires x.shape[1] == x.shape[2]"
    assert w1_weight.shape == (d_ff, d_model)
    assert w1_bias.shape == (d_ff,)
    assert w2_weight.shape == (d_model, d_ff)

    n_rows = B * I * L          # total (b, i, l) rows fed through W1
    n_groups = B * I            # one output row per (b, i)

    # Pick how many rows each grid step processes: a multiple of L (so every group's L
    # rows live in one block), as large as possible up to 1024, while keeping >= 2 grid
    # steps so v7x's two TensorCores both get work under dimension_semantics=parallel.
    if rows_per_block is None:
        rows_per_block = L
        cand = 2 * L
        while cand <= min(n_rows, 1024):
            if n_rows % cand == 0 and n_rows // cand >= 2:
                rows_per_block = cand
            cand += L
    assert n_rows % rows_per_block == 0 and rows_per_block % L == 0
    G = rows_per_block // L
    # TPU tiling rule: the output block's second-minor dim must be a multiple of 8
    # (or equal to the full extent).
    assert G % 8 == 0 or G == n_groups, "pick rows_per_block so rows_per_block//L % 8 == 0"

    x2d = x.reshape(n_rows, d_model)                 # free, contiguous reshape
    b1 = w1_bias.reshape(1, d_ff)

    # Expansion matrix folding W2: M[s, d*d_ff + s'] = (s == s') * W2[d, s'],
    # so that (wsum @ M)[g, d*d_ff + s] == wsum[g, s] * W2[d, s].
    m_expand = (jnp.tile(jnp.eye(d_ff, dtype=x.dtype), (1, d_model))
                * w2_weight.reshape(1, d_model * d_ff).astype(x.dtype))

    grid = (n_rows // rows_per_block,)
    kernel = _make_kernel(L, G, d_model, d_ff)

    out_flat = pl.pallas_call(
        kernel,
        out_shape=jax.ShapeDtypeStruct((n_groups, d_model * d_ff), x.dtype),
        grid=grid,
        in_specs=[
            pl.BlockSpec((rows_per_block, d_model), lambda i: (i, 0)),
            pl.BlockSpec((d_ff, d_model), lambda i: (0, 0)),
            pl.BlockSpec((1, d_ff), lambda i: (0, 0)),
            pl.BlockSpec((d_ff, d_model * d_ff), lambda i: (0, 0)),
        ],
        out_specs=pl.BlockSpec((G, d_model * d_ff), lambda i: (i, 0)),
        compiler_params=pltpu.CompilerParams(
            dimension_semantics=("parallel",),
            vmem_limit_bytes=48 * 1024 * 1024,
        ),
    )(x2d, w1_weight, b1, m_expand)

    # Free reshape: the flat (n_groups, d_model*d_ff) layout is bit-identical to
    # (B, I, d_model, d_ff) in row-major order.
    return out_flat.reshape(B, I, d_model, d_ff)


def _reference(x, w1_weight, w1_bias, w2_weight):
    scores = jnp.einsum("bild,fd->bilf", x, w1_weight) + w1_bias
    weights = jax.nn.softmax(scores, axis=-1)
    w2_exp = jnp.broadcast_to(w2_weight[None, None],
                              (x.shape[0], x.shape[1]) + w2_weight.shape)
    return jnp.einsum("bils,blds->bids", weights, w2_exp)


if __name__ == "__main__":
    # Small shapes consistent with the module: B=2, I=L=8, d_model=32, d_ff=64.
    B, I, L, d_model, d_ff = 2, 8, 8, 32, 64

    key = jax.random.PRNGKey(0)
    kx, kw1, kb1, kw2 = jax.random.split(key, 4)

    x = jax.random.normal(kx, (B, I, L, d_model), dtype=jnp.float32)
    # Deterministic nn.Linear-style parameter init (uniform in +-1/sqrt(fan_in)).
    w1_weight = jax.random.uniform(kw1, (d_ff, d_model), jnp.float32,
                                   -1.0 / d_model ** 0.5, 1.0 / d_model ** 0.5)
    w1_bias = jax.random.uniform(kb1, (d_ff,), jnp.float32,
                                 -1.0 / d_model ** 0.5, 1.0 / d_model ** 0.5)
    w2_weight = jax.random.uniform(kw2, (d_model, d_ff), jnp.float32,
                                   -1.0 / d_ff ** 0.5, 1.0 / d_ff ** 0.5)

    out = em_feedforward_block(x, w1_weight, w1_bias, w2_weight)
    out = jax.block_until_ready(out)

    ref = _reference(x, w1_weight, w1_bias, w2_weight)
    assert out.shape == (B, I, d_model, d_ff)
    # Tolerance loosened vs. 1e-5 because the softmax denominator uses the EUP
    # approximate reciprocal (~1e-3 relative error on the normalization).
    assert jnp.allclose(out, ref, atol=1e-3, rtol=1e-2)

    print("KERNEL_OK")
</pallas_src>

<mosaic_0001>
module attributes {stable_mosaic.version = 11 : i64} {
  func.func @kernel(%arg0: i32, %arg1: memref<64x32xf32, #tpu.memory_space<vmem>>, %arg2: memref<64x32xf32, #tpu.memory_space<vmem>>, %arg3: memref<1x64xf32, #tpu.memory_space<vmem>>, %arg4: memref<64x2048xf32, #tpu.memory_space<vmem>>, %arg5: memref<8x2048xf32, #tpu.memory_space<vmem>>) attributes {dimension_semantics = [#tpu.dimension_semantics<parallel>], iteration_bounds = array<i64: 2>, scalar_prefetch = 0 : i64, scratch_operands = 0 : i64, tpu.core_type = #tpu.core_type<tc>, window_params = [{transform_indices = @transform_0, window_bounds = array<i64: 64, 32>}, {pipeline_mode = #tpu.pipeline_mode<synchronous>, transform_indices = @transform_1, window_bounds = array<i64: 64, 32>}, {pipeline_mode = #tpu.pipeline_mode<synchronous>, transform_indices = @transform_2, window_bounds = array<i64: 1, 64>}, {pipeline_mode = #tpu.pipeline_mode<synchronous>, transform_indices = @transform_3, window_bounds = array<i64: 64, 2048>}, {transform_indices = @transform_4, window_bounds = array<i64: 8, 2048>}]} {
    %c0 = arith.constant 0 : index
    %c0_0 = arith.constant 0 : index
    %0 = vector.load %arg1[%c0, %c0_0] : memref<64x32xf32, #tpu.memory_space<vmem>>, vector<64x32xf32>
    %c0_1 = arith.constant 0 : index
    %c0_2 = arith.constant 0 : index
    %1 = vector.load %arg2[%c0_1, %c0_2] : memref<64x32xf32, #tpu.memory_space<vmem>>, vector<64x32xf32>
    %cst = arith.constant dense<0.000000e+00> : vector<64x64xf32>
    %2 = tpu.matmul %0, %1, %cst {dimension_numbers = #tpu.dot_dimension_numbers<[1], [1], [0], [0], [0, 0, 1, 0], [], []>} : vector<64x32xf32>, vector<64x32xf32>, vector<64x64xf32> -> vector<64x64xf32>
    %c0_3 = arith.constant 0 : index
    %c0_4 = arith.constant 0 : index
    %3 = vector.load %arg3[%c0_3, %c0_4] : memref<1x64xf32, #tpu.memory_space<vmem>>, vector<1x64xf32>
    %4 = vector.broadcast %3 : vector<1x64xf32> to vector<64x64xf32>
    %5 = arith.addf %2, %4 : vector<64x64xf32>
    %cst_5 = arith.constant dense<0xFF800000> : vector<64xf32>
    %6 = vector.multi_reduction <maximumf>, %5, %cst_5 [1] : vector<64x64xf32> to vector<64xf32>
    %7 = vector.shape_cast %6 : vector<64xf32> to vector<64x1xf32>
    %8 = vector.broadcast %7 : vector<64x1xf32> to vector<64x64xf32>
    %9 = arith.subf %5, %8 : vector<64x64xf32>
    %10 = math.exp %9 : vector<64x64xf32>
    %cst_6 = arith.constant dense<0.000000e+00> : vector<64xf32>
    %11 = vector.multi_reduction <add>, %10, %cst_6 [1] : vector<64x64xf32> to vector<64xf32>
    %12 = vector.shape_cast %11 : vector<64xf32> to vector<64x1xf32>
    %13 = tpu.reciprocal %12 {approx = true} : vector<64x1xf32> -> vector<64x1xf32>
    %14 = vector.broadcast %13 : vector<64x1xf32> to vector<64x64xf32>
    %15 = arith.mulf %10, %14 : vector<64x64xf32>
    %16 = vector.shape_cast %15 : vector<64x64xf32> to vector<8x8x64xf32>
    %cst_7 = arith.constant dense<0.000000e+00> : vector<8x64xf32>
    %17 = vector.multi_reduction <add>, %16, %cst_7 [1] : vector<8x8x64xf32> to vector<8x64xf32>
    %c0_8 = arith.constant 0 : index
    %c0_9 = arith.constant 0 : index
    %18 = vector.load %arg4[%c0_8, %c0_9] : memref<64x2048xf32, #tpu.memory_space<vmem>>, vector<64x2048xf32>
    %cst_10 = arith.constant dense<0.000000e+00> : vector<8x2048xf32>
    %19 = tpu.matmul %17, %18, %cst_10 {dimension_numbers = #tpu.dot_dimension_numbers<[1], [0], [0], [1], [0, 0, 1, 1], [], []>} : vector<8x64xf32>, vector<64x2048xf32>, vector<8x2048xf32> -> vector<8x2048xf32>
    %c0_11 = arith.constant 0 : index
    %c0_12 = arith.constant 0 : index
    %20 = vector.load %arg5[%c0_11, %c0_12] : memref<8x2048xf32, #tpu.memory_space<vmem>>, vector<8x2048xf32>
    tpu.vector_store %arg5[%c0_11, %c0_12], %19 {strides = array<i32>} : memref<8x2048xf32, #tpu.memory_space<vmem>>, vector<8x2048xf32>,
    return
  }
  func.func @transform_0(%arg0: i32) -> (i32, i32) {
    %c0_i32 = arith.constant 0 : i32
    %c0_i32_0 = arith.constant 0 : i32
    return %arg0, %c0_i32 : i32, i32
  }
  func.func @transform_1(%arg0: i32) -> (i32, i32) {
    %c0_i32 = arith.constant 0 : i32
    %c0_i32_0 = arith.constant 0 : i32
    %c0_i32_1 = arith.constant 0 : i32
    return %c0_i32, %c0_i32_0 : i32, i32
  }
  func.func @transform_2(%arg0: i32) -> (i32, i32) {
    %c0_i32 = arith.constant 0 : i32
    %c0_i32_0 = arith.constant 0 : i32
    %c0_i32_1 = arith.constant 0 : i32
    return %c0_i32, %c0_i32_0 : i32, i32
  }
  func.func @transform_3(%arg0: i32) -> (i32, i32) {
    %c0_i32 = arith.constant 0 : i32
    %c0_i32_0 = arith.constant 0 : i32
    %c0_i32_1 = arith.constant 0 : i32
    return %c0_i32, %c0_i32_0 : i32, i32
  }
  func.func @transform_4(%arg0: i32) -> (i32, i32) {
    %c0_i32 = arith.constant 0 : i32
    %c0_i32_0 = arith.constant 0 : i32
    return %arg0, %c0_i32 : i32, i32
  }
}

</mosaic_0001>

<bundles_post_ra>
// kernel: tpu_custom_call.1
= control target key start
LH: loop header
LB: loop body
LE: loop exit
PB: predicated region body
PF: predicated region fallthrough
CT: control target
= control target key end

     0   :  { %9 = vsyncpa [#allocation3], 0  ;;  %s1554_s0 = inlined_call_operand.vmem [shape: f32[128,32], index: 0, kind: input, shape index: {}]   ;;  %s1555_s1 = inlined_call_operand.vmem [shape: f32[64,32], index: 1, kind: input, shape index: {}]   ;;  %s1556_s2 = inlined_call_operand.vmem [shape: f32[1,64], index: 2, kind: input, shape index: {}]   ;;  %s1557_s3 = inlined_call_operand.hbm [shape: f32[64,2048], index: 3, kind: input, shape index: {}]   ;;  %s1558_s4 = inlined_call_operand.hbm [shape: f32[16,2048], index: 4, kind: output, shape index: {}]  }
   0x1   :  { %10 = vsyncpa [#allocation4], 0 }
   0x2   :  { %12 = vsyncpa [#allocation4 + $0x1], 0  ;;  %s1304_s15 = smov 0   ;;  %s1306_s16 = smov 0  }
   0x3   :  { %s1308_s17 = smov 0   ;;  %s1310_s18 = smov 0  }
   0x4 LB: > { %s1325_s19 = sadd.s32 4294967295, %s1274_s18   ;;  %s1046_s20 = sadd.s32 4294967294, %s1274_s18   ;;  %s1274_s18 = sphi %s1310_s18, %s1564_s18   ;;  %s1270_s17 = sphi %s1308_s17, %s1563_s17   ;;  %s1266_s16 = sphi %s1306_s16, %s1562_s16   ;;  %s1262_s15 = sphi %s1304_s15, %s1561_s15  }
   0x5   : > { %s1329_s21 = sadd.s32 1, %s1274_s18   ;;  %s114_s22 = sadd.s32 1, %s1270_s17 }
   0x6   : > { %s111_s23 = ssub.s32 %s1274_s18, %s1329_s21  ;;  %p124_p0 = scmp.ne.s32.totalorder %s1270_s17, %s1266_s16 }
   0x7   : > { %p112_p1 = scmp.eq.s32.totalorder %s111_s23, 0  ;;  %p125_p2 = scmp.eq.s32.totalorder %s1325_s19, 1 }
   0x8   : > { %p130_p3 = scmp.ne.s32.totalorder %s1266_s16, %s1262_s15  ;;  %p131_p4 = scmp.eq.s32.totalorder %s1046_s20, 1 }
   0x9   : > { %s1340_s24 = scalar_select %p112_p1, %s1270_s17, %s114_s22  }
   0xa   : > { %p1342_p5 = por %p125_p2, %p124_p0  ;;  %p1346_p6 = por %p131_p4, %p130_p3 }
   0xb   : > { %p1047_p7 = scmp.ge.s32.totalorder %s1274_s18, 1  ;;  %p138_p8 = scmp.lt.s32.totalorder %s1274_s18, 3 }
   0xc   : > { %p1107_p9 = scmp.eq.s32.totalorder %s1325_s19, 0  ;;  %s155_s29 = sshll.u32 %s1557_s3, 4  ;;  %s156_s29 = int_to_ptr.hbm [resolvable:$true] %s155_s29 }
   0xd   : > { %p139_p10 = pnand %p1047_p7, %p138_p8  ;;  %s1276_s30 = smov [#allocation2]  }
   0xe   : > { %s157_s5 = sshll.u32 %s1276_s30, 4  ;;  %s1277_s6 = smov 2048   ;;  %s158_s5 = int_to_ptr.vmem [resolvable:$true] %s157_s5 }
   0xf   : > { %p1099_p11 = pneg %p139_p10  ;;  %s1278_s7 = smov 128  }
  0x10   : > { %182 = sbr.rel (%p139_p10) target bundleno = 694 (0x2b6), region = 36 }
  0x11   : > { %p1100_p12 = pnand %p1107_p9, %p1099_p11 }
  0x13   : > { %1102 = dma.hbm_to_vmem [thread:$0]  (!%p1100_p12), %s156_s29, 16384, %s158_s5, [#allocation3], %s1277_s6, %s1277_s6, %s1278_s7  }
  0x15   : > { %1253 = dma.done.wait (%p1107_p9), [#allocation3], 16384  }
  0x16   : > { %1255 = vsyncadd (%p1107_p9), [#allocation3], 4294950912  ;;  %vm235_vm0 = vcmask 261120   ;;  %v230_v0 = vld [vmem:[%s1555_s1 + $0x38] sm:$0xff]  ;;  %v229_v1 = vld [vmem:[%s1555_s1 + $0x30] sm:$0xff]  ;;  %s1053_s22 = sshll.u32 %s1325_s19, 3 }
  0x17   : > { %1055 = vmatpush.xpose.msk.msra.mxu0 %vm235_vm0, %v230_v0  ;;  %v228_v2 = vld [vmem:[%s1555_s1 + $0x28] sm:$0xff]  ;;  %v227_v3 = vld [vmem:[%s1555_s1 + $0x20] sm:$0xff]  ;;  %v226_v4 = vld [vmem:[%s1555_s1 + $0x18] sm:$0xff]  ;;  %p210_p13 = scmp.lt.s32.totalorder %s1053_s22, 15  ;;  %vm325_vm1 = vcmask 523264   ;;  %vm606_vm2 = vcmask 1041409  }
  0x18   : > { %v225_v5 = vld [vmem:[%s1555_s1 + $0x10] sm:$0xff]  ;;  %v224_v6 = vld [vmem:[%s1555_s1 + $0x8] sm:$0xff]  ;;  %v223_v7 = vld [vmem:[%s1555_s1] sm:$0xff]  ;;  %vm608_vm3 = vcmask 1042434   ;;  %vm610_vm4 = vcmask 1043459   ;;  %vm612_vm5 = vcmask 1044484  }
  0x19   : > { %s1566_s22 = smov (!%p210_p13, %s1053_s22), 15  ;;  %v1145_v16 = vld [vmem:[%s1556_s2] ss:$0 sm:$0xff]  ;;  %vm614_vm6 = vcmask 1045509   ;;  %vm616_vm7 = vcmask 1046534   ;;  %vm618_vm8 = vcmask 1047559  }
  0x1a   : > { %s1054_s6 = sshll.u32 %s1566_s22, 3  ;;  %s206_s14 = sand.u32 1, %s1266_s16  }
  0x1b   : > { %1056 = vmatpush.xpose.msk.msra.mxu0 %vm235_vm0, %v229_v1  ;;  %s213_s11 = scalar_lea.vmem %s1554_s0, %s1054_s6  ;;  %s1052_s20 = sshll.u32 %s206_s14, 7 }
  0x1c   : > { %v215_v8 = vld [vmem:[%s213_s11] sm:$0xff]  ;;  %v216_v9 = vld [vmem:[%s213_s11 + $0x8] sm:$0xff]  ;;  %v217_v10 = vld [vmem:[%s213_s11 + $0x10] sm:$0xff]  ;;  %s1502_s22 = scalar_lea.vmem [#allocation5], %s1052_s20  ;;  %s1092_s23 = sshll.u32 %s1325_s19, 7 }
  0x1d   : > { %v218_v11 = vld [vmem:[%s213_s11 + $0x18] sm:$0xff]  ;;  %v219_v12 = vld [vmem:[%s213_s11 + $0x20] sm:$0xff]  ;;  %v220_v13 = vld [vmem:[%s213_s11 + $0x28] sm:$0xff]  ;;  %s970_s29 = scalar_lea.hbm %s1558_s4, %s1092_s23  ;;  %s972_s30 = sshll.u32 %s1502_s22, 4  ;;  %s973_s30 = int_to_ptr.vmem [resolvable:$true] %s972_s30 }
  0x1e   : > { %v221_v14 = vld [vmem:[%s213_s11 + $0x30] sm:$0xff]  ;;  %v222_v15 = vld [vmem:[%s213_s11 + $0x38] sm:$0xff]  ;;  %s974_s5 = sshll.u32 %s970_s29, 4  ;;  %s959_s6 = scalar_lea.sflag [#allocation4], %s206_s14  ;;  %s975_s5 = int_to_ptr.hbm [resolvable:$true] %s974_s5 }
  0x1f   : > { %1057 = vmatpush.xpose.msk.msra.mxu0 %vm235_vm0, %v228_v2  ;;  %s1222_s7 = sshra.s32 %s975_s5, 4  ;;  %s1228_s10 = scalar_lea.hbm %s1558_s4, 256  ;;  %s1223_s7 = int_to_ptr.hbm [resolvable:$true] %s1222_s7 }
  0x20   : > { %s1224_s19 = scalar_lea.hbm %s1223_s7, 128  ;;  %p1229_p3 = scmp.lt.s32.totalorder %s1223_s7, %s1558_s4 }
  0x21   : > { %p1225_p0 = scmp.ne.s32.totalorder %s1223_s7, %s1224_s19  ;;  %p1230_p4 = scmp.lt.s32.totalorder %s1228_s10, %s1224_s19 }
  0x23   : > { %1058 = vmatpush.xpose.msk.msra.mxu0 %vm235_vm0, %v227_v3  ;;  %p1226_p1 = pnand %p1225_p0, %p1342_p5  ;;  %p1231_p7 = por %p1230_p4, %p1229_p3 }
  0x25   : > { %p1227_p2 = pneg %p1226_p1 }
  0x27   : > { %1059 = vmatpush.xpose.msk.msra.mxu0 %vm235_vm0, %v226_v4  ;;  %p1232_p8 = pnand %p1231_p7, %p1227_p2 }
  0x2b   : > { %1060 = vmatpush.xpose.msk.msra.mxu0 %vm235_vm0, %v225_v5 }
  0x2f   : > { %1061 = vmatpush.xpose.msk.msra.mxu0 %vm235_vm0, %v224_v6 }
  0x33   : > { %1062 = vmatpush.xpose.msk.msra.mxu0 %vm235_vm0, %v223_v7 }
  0x36   : > { %1063 = vmatmul.msk.f32.vlgmr.msra.gmra.mxu0 %vm235_vm0, %v215_v8 }
  0x3e   : > { %1064 = vmatmul.msk.f32.gmra.mxu0 %vm235_vm0, %v216_v9 }
  0x46   : > { %1065 = vmatmul.msk.f32.gmra.mxu0 %vm235_vm0, %v217_v10 }
  0x4e   : > { %1066 = vmatmul.msk.f32.gmra.mxu0 %vm235_vm0, %v218_v11 }
  0x56   : > { %1067 = vmatmul.msk.f32.gmra.mxu0 %vm235_vm0, %v219_v12 }
  0x5e   : > { %1068 = vmatmul.msk.f32.gmra.mxu0 %vm235_vm0, %v220_v13 }
  0x66   : > { %1069 = vmatmul.msk.f32.gmra.mxu0 %vm235_vm0, %v221_v14 }
  0x6e   : > { %1070 = vmatmul.msk.f32.gmra.mxu0 %vm235_vm0, %v222_v15 }
  0xb3   : > { %v301_v17 = vpop.f32.mrf.mxu0 }
  0xb4   : > { %v302_v18 = vadd.f32 %v1145_v16, %v301_v17  ;;  %v582_v17 = vld [vmem:[#allocation2 + $0x380] sm:$0xff] }
  0xb5   : > { %630 = vmatpush.msra.mxu1 %v582_v17  ;;  %v505_v17 = vld [vmem:[#allocation2 + $0x118] sm:$0xff] }
  0xb6   : > { %v326_v19 = vsel %vm325_vm1, %v302_v18, -inf }
  0xb7   : > { %327 = vmax.xlane.f32.xlu0 %v326_v19  ;;  %v584_v19 = vld [vmem:[#allocation2 + $0x390] sm:$0xff] }
  0xb8   : > { %670 = vmatpush.msra.mxu3 %v584_v19  ;;  %v507_v19 = vld [vmem:[#allocation2 + $0x128] sm:$0xff] }
  0xbb   : > { %v304_v20 = vpop.f32.mrf.mxu0 }
  0xbc   : > { %v305_v21 = vadd.f32 %v1145_v16, %v304_v20  ;;  %v566_v20 = vld [vmem:[#allocation2 + $0x300] sm:$0xff] }
  0xbd   : > { %631 = vmatpush.msra.mxu1 %v566_v20 }
  0xbe   : > { %v329_v22 = vsel %vm325_vm1, %v305_v21, -inf }
  0xbf   : > { %330 = vmax.xlane.f32.xlu0 %v329_v22  ;;  %v568_v22 = vld [vmem:[#allocation2 + $0x310] sm:$0xff] }
  0xc0   : > { %671 = vmatpush.msra.mxu3 %v568_v22 }
  0xc3   : > { %v307_v23 = vpop.f32.mrf.mxu0 }
  0xc4   : > { %v308_v24 = vadd.f32 %v1145_v16, %v307_v23  ;;  %v550_v23 = vld [vmem:[#allocation2 + $0x280] sm:$0xff] }
  0xc5   : > { %632 = vmatpush.msra.mxu1 %v550_v23 }
  0xc6   : > { %v332_v25 = vsel %vm325_vm1, %v308_v24, -inf }
  0xc7   : > { %333 = vmax.xlane.f32.xlu1 %v332_v25  ;;  %v552_v25 = vld [vmem:[#allocation2 + $0x290] sm:$0xff] }
  0xc8   : > { %672 = vmatpush.msra.mxu3 %v552_v25  ;;  %v490_v25 = vld [vmem:[#allocation2 + $0xa0] sm:$0xff] }
  0xcb   : > { %v310_v26 = vpop.f32.mrf.mxu0 }
  0xcc   : > { %v311_v27 = vadd.f32 %v1145_v16, %v310_v26  ;;  %v534_v26 = vld [vmem:[#allocation2 + $0x200] sm:$0xff] }
  0xcd   : > { %633 = vmatpush.msra.mxu1 %v534_v26  ;;  %v491_v26 = vld [vmem:[#allocation2 + $0xa8] sm:$0xff] }
  0xce   : > { %v335_v28 = vsel %vm325_vm1, %v311_v27, -inf }
  0xcf   : > { %336 = vmax.xlane.f32.xlu1 %v335_v28  ;;  %v536_v28 = vld [vmem:[#allocation2 + $0x210] sm:$0xff] }
  0xd0   : > { %673 = vmatpush.msra.mxu3 %v536_v28 }
  0xd3   : > { %v313_v29 = vpop.f32.mrf.mxu0 }
  0xd4   : > { %v314_v30 = vadd.f32 %v1145_v16, %v313_v29 }
  0xd6   : > { %v338_v31 = vsel %vm325_vm1, %v314_v30, -inf }
  0xd7   : > { %339 = vmax.xlane.f32.xlu2 %v338_v31  ;;  %v518_v31 = vld [vmem:[#allocation2 + $0x180] sm:$0xff] }
  0xd8   : > { %634 = vmatpush.msra.mxu1 %v518_v31  ;;  %v485_v31 = vld [vmem:[#allocation2 + $0x78] sm:$0xff] }
  0xdb   : > { %v316_v32 = vpop.f32.mrf.mxu0 }
  0xdc   : > { %v317_v33 = vadd.f32 %v1145_v16, %v316_v32  ;;  %v519_v32 = vld [vmem:[#allocation2 + $0x188] sm:$0xff] }
  0xde   : > { %v341_v34 = vsel %vm325_vm1, %v317_v33, -inf }
  0xdf   : > { %342 = vmax.xlane.f32.xlu2 %v341_v34  ;;  %v502_v34 = vld [vmem:[#allocation2 + $0x100] sm:$0xff] }
  0xe0   : > { %635 = vmatpush.msra.mxu1 %v502_v34 }
  0xe3   : > { %v319_v35 = vpop.f32.mrf.mxu0 }
  0xe4   : > { %v320_v36 = vadd.f32 %v1145_v16, %v319_v35  ;;  %v503_v35 = vld [vmem:[#allocation2 + $0x108] sm:$0xff] }
  0xe6   : > { %v344_v37 = vsel %vm325_vm1, %v320_v36, -inf }
  0xe7   : > { %345 = vmax.xlane.f32.xlu0 %v344_v37  ;;  %v486_v37 = vld [vmem:[#allocation2 + $0x80] sm:$0xff] }
  0xe8   : > { %636 = vmatpush.msra.mxu1 %v486_v37 }
  0xeb   : > { %v322_v38 = vpop.f32.mrf.mxu0 }
  0xec   : > { %v323_v39 = vadd.f32 %v1145_v16, %v322_v38  ;;  %v487_v38 = vld [vmem:[#allocation2 + $0x88] sm:$0xff] }
  0xee   : > { %v347_v40 = vsel %vm325_vm1, %v323_v39, -inf }
  0xef   : > { %348 = vmax.xlane.f32.xlu1 %v347_v40 }
 0x12a   : > { %v328_v41 = vpop.xlane.xlu0 %327 }
 0x12b   : > { %v350_v42 = vsub.f32 %v302_v18, %v328_v41  ;;  %v583_v18 = vld [vmem:[#allocation2 + $0x388] sm:$0xff]  ;;  %v470_v41 = vld [vmem:[#allocation2] sm:$0xff] }
 0x12c   : > { %650 = vmatpush.msra.mxu2 %v583_v18  ;;  %637 = vmatpush.msra.mxu1 %v470_v41  ;;  %v506_v18 = vld [vmem:[#allocation2 + $0x120] sm:$0xff] }
 0x12d   : > { %v358_v43 = vmul.f32 1.442695, %v350_v42  ;;  %v471_v42 = vld [vmem:[#allocation2 + $0x8] sm:$0xff] }
 0x12f   : > { %1146 = vpow2.f32 %v358_v43  ;;  %v472_v43 = vld [vmem:[#allocation2 + $0x10] sm:$0xff] }
 0x132   : > { %v331_v44 = vpop.xlane.xlu0 %330 }
 0x133   : > { %v351_v45 = vsub.f32 %v305_v21, %v331_v44  ;;  %v567_v21 = vld [vmem:[#allocation2 + $0x308] sm:$0xff] }
 0x134   : > { %651 = vmatpush.msra.mxu2 %v567_v21  ;;  %v517_v21 = vld [vmem:[#allocation2 + $0x178] sm:$0xff] }
 0x135   : > { %v1417_v46 = vpop.eup %1146  ;;  %v360_v47 = vmul.f32 1.442695, %v351_v45  ;;  %v585_v45 = vld [vmem:[#allocation2 + $0x398] sm:$0xff] }
 0x136   : > { %v374_v48 = vsel %vm325_vm1, %v1417_v46, 0.0  ;;  %690 = vmatpush.msrb.mxu1 %v585_v45 }
 0x137   : > { %1148 = vpow2.f32 %v360_v47  ;;  %375 = vadd.xlane.f32.xlu2 %v374_v48  ;;  %v586_v47 = vld [vmem:[#allocation2 + $0x3a0] sm:$0xff]  ;;  %v587_v48 = vld [vmem:[#allocation2 + $0x3a8] sm:$0xff] }
 0x13a   : > { %v334_v49 = vpop.xlane.xlu1 %333 }
 0x13b   : > { %v352_v50 = vsub.f32 %v308_v24, %v334_v49  ;;  %v551_v24 = vld [vmem:[#allocation2 + $0x288] sm:$0xff] }
 0x13c   : > { %652 = vmatpush.msra.mxu2 %v551_v24  ;;  %v489_v24 = vld [vmem:[#allocation2 + $0x98] sm:$0xff] }
 0x13d   : > { %v1421_v51 = vpop.eup %1148  ;;  %v362_v52 = vmul.f32 1.442695, %v352_v50  ;;  %v597_v50 = vld [vmem:[#allocation2 + $0x3f8] sm:$0xff] }
 0x13e   : > { %v377_v53 = vsel %vm325_vm1, %v1421_v51, 0.0  ;;  %930 = vmatpush.msrb.mxu0 %v597_v50 }
 0x13f   : > { %1150 = vpow2.f32 %v362_v52  ;;  %378 = vadd.xlane.f32.xlu0 %v377_v53  ;;  %v569_v52 = vld [vmem:[#allocation2 + $0x318] sm:$0xff]  ;;  %v570_v53 = vld [vmem:[#allocation2 + $0x320] sm:$0xff] }
 0x140   : > { %691 = vmatpush.msrb.mxu1 %v569_v52 }
 0x142   : > { %v337_v54 = vpop.xlane.xlu1 %336 }
 0x143   : > { %v353_v55 = vsub.f32 %v311_v27, %v337_v54  ;;  %v535_v27 = vld [vmem:[#allocation2 + $0x208] sm:$0xff] }
 0x144   : > { %653 = vmatpush.msra.mxu2 %v535_v27  ;;  %v571_v54 = vld [vmem:[#allocation2 + $0x328] sm:$0xff]  ;;  %v501_v27 = vld [vmem:[#allocation2 + $0xf8] sm:$0xff] }
 0x145   : > { %v1425_v56 = vpop.eup %1150  ;;  %v364_v57 = vmul.f32 1.442695, %v353_v55  ;;  %v581_v55 = vld [vmem:[#allocation2 + $0x378] sm:$0xff] }
 0x146   : > { %v380_v58 = vsel %vm325_vm1, %v1425_v56, 0.0  ;;  %654 = vmatpush.msra.mxu2 %v519_v32  ;;  %931 = vmatpush.msrb.mxu0 %v581_v55 }
 0x147   : > { %1152 = vpow2.f32 %v364_v57  ;;  %381 = vadd.xlane.f32.xlu1 %v380_v58  ;;  %v553_v57 = vld [vmem:[#allocation2 + $0x298] sm:$0xff]  ;;  %v554_v58 = vld [vmem:[#allocation2 + $0x2a0] sm:$0xff] }
 0x148   : > { %655 = vmatpush.msra.mxu2 %v503_v35  ;;  %692 = vmatpush.msrb.mxu1 %v553_v57 }
 0x14a   : > { %v340_v59 = vpop.xlane.xlu2 %339  ;;  %656 = vmatpush.msra.mxu2 %v487_v38 }
 0x14b   : > { %v354_v60 = vsub.f32 %v314_v30, %v340_v59  ;;  %v555_v59 = vld [vmem:[#allocation2 + $0x2a8] sm:$0xff] }
 0x14c   : > { %657 = vmatpush.msra.mxu2 %v471_v42 }
 0x14d   : > { %v1429_v61 = vpop.eup %1152  ;;  %v366_v62 = vmul.f32 1.442695, %v354_v60  ;;  %v565_v60 = vld [vmem:[#allocation2 + $0x2f8] sm:$0xff] }
 0x14e   : > { %v383_v63 = vsel %vm325_vm1, %v1429_v61, 0.0  ;;  %710 = vmatpush.msrb.mxu2 %v586_v47  ;;  %932 = vmatpush.msrb.mxu0 %v565_v60 }
 0x14f   : > { %1154 = vpow2.f32 %v366_v62  ;;  %384 = vadd.xlane.f32.xlu2 %v383_v63  ;;  %v537_v63 = vld [vmem:[#allocation2 + $0x218] sm:$0xff] }
 0x150   : > { %711 = vmatpush.msrb.mxu2 %v570_v53  ;;  %693 = vmatpush.msrb.mxu1 %v537_v63 }
 0x152   : > { %v343_v0 = vpop.xlane.xlu2 %342  ;;  %712 = vmatpush.msrb.mxu2 %v554_v58 }
 0x153   : > { %v355_v1 = vsub.f32 %v317_v33, %v343_v0  ;;  %v520_v33 = vld [vmem:[#allocation2 + $0x190] sm:$0xff]  ;;  %v538_v0 = vld [vmem:[#allocation2 + $0x220] sm:$0xff] }
 0x154   : > { %674 = vmatpush.msra.mxu3 %v520_v33  ;;  %713 = vmatpush.msrb.mxu2 %v538_v0 }
 0x155   : > { %v1433_v2 = vpop.eup %1154  ;;  %v368_v3 = vmul.f32 1.442695, %v355_v1  ;;  %v539_v1 = vld [vmem:[#allocation2 + $0x228] sm:$0xff] }
 0x156   : > { %v386_v4 = vsel %vm325_vm1, %v1433_v2, 0.0 }
 0x157   : > { %1156 = vpow2.f32 %v368_v3  ;;  %387 = vadd.xlane.f32.xlu0 %v386_v4  ;;  %v549_v4 = vld [vmem:[#allocation2 + $0x278] sm:$0xff] }
 0x158   : > { %933 = vmatpush.msrb.mxu0 %v549_v4 }
 0x15a   : > { %v346_v5 = vpop.xlane.xlu0 %345 }
 0x15b   : > { %v356_v6 = vsub.f32 %v320_v36, %v346_v5  ;;  %v504_v36 = vld [vmem:[#allocation2 + $0x110] sm:$0xff] }
 0x15c   : > { %675 = vmatpush.msra.mxu3 %v504_v36 }
 0x15d   : > { %v1437_v7 = vpop.eup %1156  ;;  %v370_v8 = vmul.f32 1.442695, %v356_v6 }
 0x15e   : > { %v389_v9 = vsel %vm325_vm1, %v1437_v7, 0.0 }
 0x15f   : > { %1158 = vpow2.f32 %v370_v8  ;;  %390 = vadd.xlane.f32.xlu1 %v389_v9  ;;  %v521_v8 = vld [vmem:[#allocation2 + $0x198] sm:$0xff]  ;;  %v522_v9 = vld [vmem:[#allocation2 + $0x1a0] sm:$0xff] }
 0x160   : > { %694 = vmatpush.msrb.mxu1 %v521_v8  ;;  %714 = vmatpush.msrb.mxu2 %v522_v9 }
 0x162   : > { %v349_v10 = vpop.xlane.xlu1 %348  ;;  %695 = vmatpush.msrb.mxu1 %v505_v17  ;;  %715 = vmatpush.msrb.mxu2 %v506_v18 }
 0x163   : > { %v357_v11 = vsub.f32 %v323_v39, %v349_v10  ;;  %v488_v39 = vld [vmem:[#allocation2 + $0x90] sm:$0xff]  ;;  %v523_v10 = vld [vmem:[#allocation2 + $0x1a8] sm:$0xff] }
 0x164   : > { %676 = vmatpush.msra.mxu3 %v488_v39  ;;  %696 = vmatpush.msrb.mxu1 %v489_v24 }
 0x165   : > { %v1441_v12 = vpop.eup %1158  ;;  %v372_v13 = vmul.f32 1.442695, %v357_v11  ;;  %716 = vmatpush.msrb.mxu2 %v490_v25 }
 0x166   : > { %v392_v14 = vsel %vm325_vm1, %v1441_v12, 0.0  ;;  %677 = vmatpush.msra.mxu3 %v472_v43 }
 0x167   : > { %1160 = vpow2.f32 %v372_v13  ;;  %393 = vadd.xlane.f32.xlu2 %v392_v14  ;;  %v533_v13 = vld [vmem:[#allocation2 + $0x1f8] sm:$0xff] }
 0x168   : > { %730 = vmatpush.msrb.mxu3 %v587_v48  ;;  %934 = vmatpush.msrb.mxu0 %v533_v13 }
 0x16a   : > { %731 = vmatpush.msrb.mxu3 %v571_v54  ;;  %935 = vmatpush.msrb.mxu0 %v517_v21 }
 0x16c   : > { %732 = vmatpush.msrb.mxu3 %v555_v59  ;;  %936 = vmatpush.msrb.mxu0 %v501_v27 }
 0x16d   : > { %v1445_v15 = vpop.eup %1160 }
 0x16e   : > { %v395_v16 = vsel %vm325_vm1, %v1445_v15, 0.0  ;;  %733 = vmatpush.msrb.mxu3 %v539_v1  ;;  %937 = vmatpush.msrb.mxu0 %v485_v31 }
 0x16f   : > { %396 = vadd.xlane.f32.xlu0 %v395_v16 }
 0x170   : > { %734 = vmatpush.msrb.mxu3 %v523_v10 }
 0x172   : > { %735 = vmatpush.msrb.mxu3 %v507_v19 }
 0x174   : > { %736 = vmatpush.msrb.mxu3 %v491_v26 }
 0x1aa   : > { %v376_v29 = vpop.xlane.xlu2 %375 }
 0x1ab   : > { %1162 = vrcp.f32 %v376_v29  ;;  %v474_v29 = vld [vmem:[#allocation2 + $0x20] sm:$0xff] }
 0x1ac   : > { %717 = vmatpush.msrb.mxu2 %v474_v29 }
 0x1b1   : > { %v1163_v62 = vpop.eup %1162 }
 0x1b2   : > { %v379_v30 = vpop.xlane.xlu0 %378  ;;  %v406_v22 = vmul.f32 %v1163_v62, %v1417_v46 }
 0x1b3   : > { %1164 = vrcp.f32 %v379_v30  ;;  %v475_v30 = vld [vmem:[#allocation2 + $0x28] sm:$0xff] }
 0x1b4   : > { %v414_v32 = vsel %vm325_vm1, %v406_v22, 0.0  ;;  %737 = vmatpush.msrb.mxu3 %v475_v30 }
 0x1b5   : > { %v415_v39 = vrot.slane %v414_v32, 4 }
 0x1b7   : > { %v416_v47 = vadd.f32 %v415_v39, %v414_v32  ;;  %v573_v39 = vld [vmem:[#allocation2 + $0x338] sm:$0xff] }
 0x1b9   : > { %v1165_v3 = vpop.eup %1164  ;;  %v417_v57 = vrot.slane %v416_v47, 2 }
 0x1ba   : > { %v382_v40 = vpop.xlane.xlu1 %381  ;;  %v407_v16 = vmul.f32 %v1165_v3, %v1421_v51 }
 0x1bb   : > { %1166 = vrcp.f32 %v382_v40  ;;  %v418_v4 = vadd.f32 %v417_v57, %v416_v47  ;;  %v542_v47 = vld [vmem:[#allocation2 + $0x240] sm:$0xff] }
 0x1bc   : > { %v421_v28 = vsel %vm325_vm1, %v407_v16, 0.0  ;;  %v494_v57 = vld [vmem:[#allocation2 + $0xc0] sm:$0xff] }
 0x1bd   : > { %v422_v35 = vrot.slane %v421_v28, 4  ;;  %v419_v16 = vrot.slane %v418_v4, 1 }
 0x1bf   : > { %v423_v42 = vadd.f32 %v422_v35, %v421_v28  ;;  %v420_v25 = vadd.f32 %v419_v16, %v418_v4  ;;  %v577_v4 = vld [vmem:[#allocation2 + $0x358] sm:$0xff]  ;;  %v511_v16 = vld [vmem:[#allocation2 + $0x148] sm:$0xff] }
 0x1c1   : > { %v1167_v5 = vpop.eup %1166  ;;  %v424_v52 = vrot.slane %v423_v42, 2 }
 0x1c2   : > { %v385_v44 = vpop.xlane.xlu2 %384  ;;  %v408_v20 = vmul.f32 %v1167_v5, %v1425_v56  ;;  %v473_v56 = vld [vmem:[#allocation2 + $0x18] sm:$0xff] }
 0x1c3   : > { %1168 = vrcp.f32 %v385_v44  ;;  %697 = vmatpush.msrb.mxu1 %v473_v56  ;;  %v425_v62 = vadd.f32 %v424_v52, %v423_v42  ;;  %v557_v42 = vld [vmem:[#allocation2 + $0x2b8] sm:$0xff] }
 0x1c4   : > { %v509_v52 = vld [vmem:[#allocation2 + $0x138] sm:$0xff] }
 0x1c5   : > { %v426_v9 = vrot.slane %v425_v62, 1 }
 0x1c9   : > { %v1169_v11 = vpop.eup %1168 }
 0x1ca   : > { %v388_v49 = vpop.xlane.xlu0 %387  ;;  %v409_v23 = vmul.f32 %v1169_v11, %v1429_v61  ;;  %v428_v61 = vsel %vm325_vm1, %v408_v20, 0.0  ;;  %v427_v20 = vadd.f32 %v426_v9, %v425_v62  ;;  %v591_v62 = vld [vmem:[#allocation2 + $0x3c8] sm:$0xff]  ;;  %v544_v9 = vld [vmem:[#allocation2 + $0x250] sm:$0xff] }
 0x1cb   : > { %1170 = vrcp.f32 %v388_v49  ;;  %v429_v37 = vrot.slane %v428_v61, 4 }
 0x1cc   : > { %v607_v27 = vsel %vm606_vm2, %v427_v20, %v420_v25  ;;  %v496_v20 = vld [vmem:[#allocation2 + $0xd0] sm:$0xff]  ;;  %v594_v25 = vld [vmem:[#allocation2 + $0x3e0] sm:$0xff] }
 0x1cd   : > { %v430_v44 = vadd.f32 %v429_v37, %v428_v61  ;;  %v590_v37 = vld [vmem:[#allocation2 + $0x3c0] sm:$0xff] }
 0x1cf   : > { %v431_v54 = vrot.slane %v430_v44, 2 }
 0x1d1   : > { %v1171_v14 = vpop.eup %1170  ;;  %v432_v1 = vadd.f32 %v431_v54, %v430_v44  ;;  %v540_v44 = vld [vmem:[#allocation2 + $0x230] sm:$0xff] }
 0x1d2   : > { %v391_v6 = vpop.xlane.xlu1 %390  ;;  %v410_v51 = vmul.f32 %v1171_v14, %v1433_v2  ;;  %v435_v2 = vsel %vm325_vm1, %v409_v23, 0.0  ;;  %v492_v54 = vld [vmem:[#allocation2 + $0xb0] sm:$0xff] }
 0x1d3   : > { %1172 = vrcp.f32 %v391_v6  ;;  %v436_v40 = vrot.slane %v435_v2, 4  ;;  %v433_v11 = vrot.slane %v432_v1, 1 }
 0x1d4   : > { %v442_v36 = vsel %vm325_vm1, %v410_v51, 0.0 }
 0x1d5   : > { %v443_v41 = vrot.slane %v442_v36, 4  ;;  %v434_v23 = vadd.f32 %v433_v11, %v432_v1  ;;  %v575_v1 = vld [vmem:[#allocation2 + $0x348] sm:$0xff] }
 0x1d6   : > { %v527_v11 = vld [vmem:[#allocation2 + $0x1c8] sm:$0xff] }
 0x1d7   : > { %v444_v48 = vadd.f32 %v443_v41, %v442_v36  ;;  %v609_v29 = vsel %vm608_vm3, %v434_v23, %v607_v27  ;;  %v589_v36 = vld [vmem:[#allocation2 + $0x3b8] sm:$0xff]  ;;  %v556_v41 = vld [vmem:[#allocation2 + $0x2b0] sm:$0xff]  ;;  %v579_v27 = vld [vmem:[#allocation2 + $0x368] sm:$0xff] }
 0x1d8   : > { %v480_v23 = vld [vmem:[#allocation2 + $0x50] sm:$0xff] }
 0x1d9   : > { %v1173_v46 = vpop.eup %1172  ;;  %v445_v60 = vrot.slane %v444_v48, 2 }
 0x1da   : > { %v411_v33 = vmul.f32 %v1173_v46, %v1437_v7  ;;  %v394_v34 = vpop.xlane.xlu2 %393  ;;  %v437_v7 = vadd.f32 %v436_v40, %v435_v2  ;;  %v574_v40 = vld [vmem:[#allocation2 + $0x340] sm:$0xff] }
 0x1db   : > { %1174 = vrcp.f32 %v394_v34  ;;  %v588_v34 = vld [vmem:[#allocation2 + $0x3b0] sm:$0xff] }
 0x1dc   : > { %v449_v38 = vsel %vm325_vm1, %v411_v33, 0.0  ;;  %v438_v58 = vrot.slane %v437_v7, 2 }
 0x1dd   : > { %v450_v43 = vrot.slane %v449_v38, 4 }
 0x1de   : > { %v439_v5 = vadd.f32 %v438_v58, %v437_v7  ;;  %v524_v7 = vld [vmem:[#allocation2 + $0x1b0] sm:$0xff] }
 0x1df   : > { %v451_v53 = vadd.f32 %v450_v43, %v449_v38  ;;  %v572_v38 = vld [vmem:[#allocation2 + $0x330] sm:$0xff]  ;;  %v558_v43 = vld [vmem:[#allocation2 + $0x2c0] sm:$0xff] }
 0x1e0   : > { %v440_v17 = vrot.slane %v439_v5, 1  ;;  %v476_v58 = vld [vmem:[#allocation2 + $0x30] sm:$0xff] }
 0x1e1   : > { %v1175_v45 = vpop.eup %1174  ;;  %v452_v63 = vrot.slane %v451_v53, 2 }
 0x1e2   : > { %v412_v49 = vmul.f32 %v1175_v45, %v1441_v12  ;;  %v397_v50 = vpop.xlane.xlu0 %396  ;;  %v446_v12 = vadd.f32 %v445_v60, %v444_v48  ;;  %v441_v26 = vadd.f32 %v440_v17, %v439_v5  ;;  %v541_v45 = vld [vmem:[#allocation2 + $0x238] sm:$0xff]  ;;  %v478_v60 = vld [vmem:[#allocation2 + $0x40] sm:$0xff]  ;;  %v559_v5 = vld [vmem:[#allocation2 + $0x2c8] sm:$0xff] }
 0x1e3   : > { %1176 = vrcp.f32 %v397_v50  ;;  %v453_v10 = vadd.f32 %v452_v63, %v451_v53  ;;  %v525_v48 = vld [vmem:[#allocation2 + $0x1b8] sm:$0xff]  ;;  %v508_v50 = vld [vmem:[#allocation2 + $0x130] sm:$0xff]  ;;  %v510_v53 = vld [vmem:[#allocation2 + $0x140] sm:$0xff] }
 0x1e4   : > { %v456_v55 = vsel %vm325_vm1, %v412_v49, 0.0  ;;  %v447_v19 = vrot.slane %v446_v12, 1  ;;  %v611_v46 = vsel %vm610_vm4, %v441_v26, %v609_v29  ;;  %v526_v49 = vld [vmem:[#allocation2 + $0x1c0] sm:$0xff]  ;;  %v592_v63 = vld [vmem:[#allocation2 + $0x3d0] sm:$0xff]  ;;  %v595_v26 = vld [vmem:[#allocation2 + $0x3e8] sm:$0xff] }
 0x1e5   : > { %v457_v59 = vrot.slane %v456_v55, 4  ;;  %v454_v21 = vrot.slane %v453_v10, 1  ;;  %v512_v17 = vld [vmem:[#allocation2 + $0x150] sm:$0xff]  ;;  %v563_v29 = vld [vmem:[#allocation2 + $0x2e8] sm:$0xff] }
 0x1e6   : > { %v448_v51 = vadd.f32 %v447_v19, %v446_v12  ;;  %v561_v12 = vld [vmem:[#allocation2 + $0x2d8] sm:$0xff]  ;;  %v495_v19 = vld [vmem:[#allocation2 + $0xc8] sm:$0xff] }
 0x1e7   : > { %v458_v0 = vadd.f32 %v457_v59, %v456_v55  ;;  %v455_v28 = vadd.f32 %v454_v21, %v453_v10  ;;  %v493_v55 = vld [vmem:[#allocation2 + $0xb8] sm:$0xff] }
 0x1e8   : > { %v613_v31 = vsel %vm612_vm5, %v448_v51, %v611_v46  ;;  %v477_v59 = vld [vmem:[#allocation2 + $0x38] sm:$0xff]  ;;  %v578_v51 = vld [vmem:[#allocation2 + $0x360] sm:$0xff] }
 0x1e9   : > { %v1177_v3 = vpop.eup %1176  ;;  %v459_v6 = vrot.slane %v458_v0, 2  ;;  %v615_v32 = vsel %vm614_vm6, %v455_v28, %v613_v31  ;;  %v545_v10 = vld [vmem:[#allocation2 + $0x258] sm:$0xff]  ;;  %v580_v28 = vld [vmem:[#allocation2 + $0x370] sm:$0xff]  ;;  %v546_v46 = vld [vmem:[#allocation2 + $0x260] sm:$0xff] }
 0x1ea   : > { %v413_v8 = vmul.f32 %v1177_v3, %v1445_v15  ;;  %v576_v3 = vld [vmem:[#allocation2 + $0x350] sm:$0xff]  ;;  %v497_v21 = vld [vmem:[#allocation2 + $0xd8] sm:$0xff] }
 0x1eb   : > { %v460_v13 = vadd.f32 %v459_v6, %v458_v0  ;;  %v593_v0 = vld [vmem:[#allocation2 + $0x3d8] sm:$0xff]  ;;  %v560_v6 = vld [vmem:[#allocation2 + $0x2d0] sm:$0xff] }
 0x1ec   : > { %v463_v14 = vsel %vm325_vm1, %v413_v8, 0.0  ;;  %v543_v8 = vld [vmem:[#allocation2 + $0x248] sm:$0xff]  ;;  %v548_v31 = vld [vmem:[#allocation2 + $0x270] sm:$0xff] }
 0x1ed   : > { %v464_v18 = vrot.slane %v463_v14, 4  ;;  %v461_v24 = vrot.slane %v460_v13, 1 }
 0x1ef   : > { %v465_v22 = vadd.f32 %v464_v18, %v463_v14  ;;  %v462_v30 = vadd.f32 %v461_v24, %v460_v13  ;;  %v528_v13 = vld [vmem:[#allocation2 + $0x1d0] sm:$0xff]  ;;  %v529_v14 = vld [vmem:[#allocation2 + $0x1d8] sm:$0xff] }
 0x1f0   : > { %v513_v18 = vld [vmem:[#allocation2 + $0x158] sm:$0xff] }
 0x1f1   : > { %v466_v15 = vrot.slane %v465_v22, 2  ;;  %v617_v33 = vsel %vm616_vm7, %v462_v30, %v615_v32  ;;  %v481_v24 = vld [vmem:[#allocation2 + $0x58] sm:$0xff]  ;;  %v564_v30 = vld [vmem:[#allocation2 + $0x2f0] sm:$0xff]  ;;  %v530_v32 = vld [vmem:[#allocation2 + $0x1e0] sm:$0xff] }
 0x1f3   : > { %v467_v56 = vadd.f32 %v466_v15, %v465_v22  ;;  %v479_v22 = vld [vmem:[#allocation2 + $0x48] sm:$0xff]  ;;  %v596_v15 = vld [vmem:[#allocation2 + $0x3f0] sm:$0xff] }
 0x1f5   : > { %v468_v61 = vrot.slane %v467_v56, 1 }
 0x1f7   : > { %v469_v2 = vadd.f32 %v468_v61, %v467_v56  ;;  %v562_v56 = vld [vmem:[#allocation2 + $0x2e0] sm:$0xff]  ;;  %v547_v61 = vld [vmem:[#allocation2 + $0x268] sm:$0xff] }
 0x1f9   : > { %v1465_v35 = vsel %vm618_vm8, %v469_v2, %v617_v33  ;;  %v531_v2 = vld [vmem:[#allocation2 + $0x1e8] sm:$0xff]  ;;  %v532_v33 = vld [vmem:[#allocation2 + $0x1f0] sm:$0xff] }
 0x1fa   : > { %1071 = vmatmul.msk.f32.vlgmr.msra.gmra.mxu1 %vm325_vm1, %v1465_v35  ;;  %1072 = vmatmul.msk.f32.vlgmr.msra.gmra.mxu2 %vm325_vm1, %v1465_v35 }
 0x1fb   : > { %1073 = vmatmul.msk.f32.vlgmr.msra.gmra.mxu3 %vm325_vm1, %v1465_v35  ;;  %750 = vmatpush.msra.mxu1 %v588_v34  ;;  %v514_v34 = vld [vmem:[#allocation2 + $0x160] sm:$0xff] }
 0x1fc   : > { %770 = vmatpush.msra.mxu2 %v589_v36  ;;  %790 = vmatpush.msra.mxu3 %v590_v37  ;;  %v515_v36 = vld [vmem:[#allocation2 + $0x168] sm:$0xff]  ;;  %v516_v37 = vld [vmem:[#allocation2 + $0x170] sm:$0xff] }
 0x1fd   : > { %1086 = vmatmul.msk.f32.vlgmr.msrb.gmra.mxu0 %vm325_vm1, %v1465_v35  ;;  %751 = vmatpush.msra.mxu1 %v572_v38  ;;  %v498_v38 = vld [vmem:[#allocation2 + $0xe0] sm:$0xff] }
 0x1fe   : > { %771 = vmatpush.msra.mxu2 %v573_v39  ;;  %791 = vmatpush.msra.mxu3 %v574_v40  ;;  %v499_v39 = vld [vmem:[#allocation2 + $0xe8] sm:$0xff]  ;;  %v500_v40 = vld [vmem:[#allocation2 + $0xf0] sm:$0xff] }
 0x1ff   : > { %752 = vmatpush.msra.mxu1 %v556_v41  ;;  %v482_v41 = vld [vmem:[#allocation2 + $0x60] sm:$0xff] }
 0x200   : > { %772 = vmatpush.msra.mxu2 %v557_v42  ;;  %792 = vmatpush.msra.mxu3 %v558_v43  ;;  %v483_v42 = vld [vmem:[#allocation2 + $0x68] sm:$0xff]  ;;  %v484_v43 = vld [vmem:[#allocation2 + $0x70] sm:$0xff] }
 0x201   : > { %753 = vmatpush.msra.mxu1 %v540_v44 }
 0x202   : > { %773 = vmatpush.msra.mxu2 %v541_v45  ;;  %793 = vmatpush.msra.mxu3 %v542_v47 }
 0x203   : > { %1074 = vmatmul.msk.f32.vlgmr.msrb.gmra.mxu1 %vm325_vm1, %v1465_v35  ;;  %1075 = vmatmul.msk.f32.vlgmr.msrb.gmra.mxu2 %vm325_vm1, %v1465_v35 }
 0x204   : > { %1076 = vmatmul.msk.f32.vlgmr.msrb.gmra.mxu3 %vm325_vm1, %v1465_v35  ;;  %754 = vmatpush.msra.mxu1 %v524_v7 }
 0x205   : > { %774 = vmatpush.msra.mxu2 %v525_v48  ;;  %794 = vmatpush.msra.mxu3 %v526_v49 }
 0x206   : > { %755 = vmatpush.msra.mxu1 %v508_v50 }
 0x207   : > { %775 = vmatpush.msra.mxu2 %v509_v52  ;;  %795 = vmatpush.msra.mxu3 %v510_v53 }
 0x208   : > { %756 = vmatpush.msra.mxu1 %v492_v54 }
 0x209   : > { %776 = vmatpush.msra.mxu2 %v493_v55  ;;  %796 = vmatpush.msra.mxu3 %v494_v57 }
 0x20a   : > { %757 = vmatpush.msra.mxu1 %v476_v58 }
 0x20b   : > { %777 = vmatpush.msra.mxu2 %v477_v59  ;;  %797 = vmatpush.msra.mxu3 %v478_v60 }
 0x20c   : > { %810 = vmatpush.msrb.mxu1 %v591_v62  ;;  %1078 = vmatmul.msk.f32.vlgmr.msra.gmra.mxu2 %vm325_vm1, %v1465_v35 }
 0x20d   : > { %830 = vmatpush.msrb.mxu2 %v592_v63  ;;  %850 = vmatpush.msrb.mxu3 %v593_v0 }
 0x20e   : > { %1077 = vmatmul.msk.f32.vlgmr.msra.gmra.mxu1 %vm325_vm1, %v1465_v35  ;;  %1079 = vmatmul.msk.f32.vlgmr.msra.gmra.mxu3 %vm325_vm1, %v1465_v35 }
 0x20f   : > { %811 = vmatpush.msrb.mxu1 %v575_v1  ;;  %831 = vmatpush.msrb.mxu2 %v576_v3 }
 0x210   : > { %851 = vmatpush.msrb.mxu3 %v577_v4 }
 0x211   : > { %812 = vmatpush.msrb.mxu1 %v559_v5  ;;  %832 = vmatpush.msrb.mxu2 %v560_v6 }
 0x212   : > { %852 = vmatpush.msrb.mxu3 %v561_v12 }
 0x213   : > { %813 = vmatpush.msrb.mxu1 %v543_v8  ;;  %833 = vmatpush.msrb.mxu2 %v544_v9 }
 0x214   : > { %853 = vmatpush.msrb.mxu3 %v545_v10 }
 0x215   : > { %814 = vmatpush.msrb.mxu1 %v527_v11  ;;  %834 = vmatpush.msrb.mxu2 %v528_v13 }
 0x216   : > { %854 = vmatpush.msrb.mxu3 %v529_v14 }
 0x217   : > { %815 = vmatpush.msrb.mxu1 %v511_v16  ;;  %835 = vmatpush.msrb.mxu2 %v512_v17 }
 0x218   : > { %855 = vmatpush.msrb.mxu3 %v513_v18 }
 0x219   : > { %816 = vmatpush.msrb.mxu1 %v495_v19  ;;  %836 = vmatpush.msrb.mxu2 %v496_v20 }
 0x21a   : > { %856 = vmatpush.msrb.mxu3 %v497_v21 }
 0x21b   : > { %817 = vmatpush.msrb.mxu1 %v479_v22  ;;  %837 = vmatpush.msrb.mxu2 %v480_v23 }
 0x21c   : > { %857 = vmatpush.msrb.mxu3 %v481_v24  ;;  %1080 = vmatmul.msk.f32.vlgmr.msrb.gmra.mxu1 %vm325_vm1, %v1465_v35 }
 0x21d   : > { %1081 = vmatmul.msk.f32.vlgmr.msrb.gmra.mxu2 %vm325_vm1, %v1465_v35  ;;  %1082 = vmatmul.msk.f32.vlgmr.msrb.gmra.mxu3 %vm325_vm1, %v1465_v35 }
 0x21e   : > { %870 = vmatpush.msra.mxu1 %v594_v25  ;;  %890 = vmatpush.msra.mxu2 %v595_v26 }
 0x21f   : > { %910 = vmatpush.msra.mxu3 %v596_v15 }
 0x220   : > { %871 = vmatpush.msra.mxu1 %v578_v51  ;;  %891 = vmatpush.msra.mxu2 %v579_v27 }
 0x221   : > { %911 = vmatpush.msra.mxu3 %v580_v28 }
 0x222   : > { %872 = vmatpush.msra.mxu1 %v562_v56  ;;  %892 = vmatpush.msra.mxu2 %v563_v29 }
 0x223   : > { %912 = vmatpush.msra.mxu3 %v564_v30 }
 0x224   : > { %873 = vmatpush.msra.mxu1 %v546_v46  ;;  %893 = vmatpush.msra.mxu2 %v547_v61 }
 0x225   : > { %913 = vmatpush.msra.mxu3 %v548_v31 }
 0x226   : > { %874 = vmatpush.msra.mxu1 %v530_v32  ;;  %894 = vmatpush.msra.mxu2 %v531_v2 }
 0x227   : > { %914 = vmatpush.msra.mxu3 %v532_v33 }
 0x228   : > { %875 = vmatpush.msra.mxu1 %v514_v34  ;;  %895 = vmatpush.msra.mxu2 %v515_v36 }
 0x229   : > { %915 = vmatpush.msra.mxu3 %v516_v37 }
 0x22a   : > { %876 = vmatpush.msra.mxu1 %v498_v38  ;;  %896 = vmatpush.msra.mxu2 %v499_v39 }
 0x22b   : > { %916 = vmatpush.msra.mxu3 %v500_v40 }
 0x22c   : > { %877 = vmatpush.msra.mxu1 %v482_v41  ;;  %897 = vmatpush.msra.mxu2 %v483_v42 }
 0x22d   : > { %917 = vmatpush.msra.mxu3 %v484_v43  ;;  %1083 = vmatmul.msk.f32.vlgmr.msra.gmra.mxu1 %vm325_vm1, %v1465_v35 }
 0x22e   : > { %1084 = vmatmul.msk.f32.vlgmr.msra.gmra.mxu2 %vm325_vm1, %v1465_v35  ;;  %1085 = vmatmul.msk.f32.vlgmr.msra.gmra.mxu3 %vm325_vm1, %v1465_v35 }
 0x277   : > { %v639_v44 = vpop.f32.mrf.mxu1 }
 0x278   : > { %942 = vst [vmem:[%s1502_s22] sm:$0xff] %v639_v44 }
 0x27a   : > { %v939_v45 = vpop.f32.mrf.mxu0 }
 0x27b   : > { %957 = vst [vmem:[%s1502_s22 + $0x78] sm:$0xff] %v939_v45 }
 0x27d   : > { %v659_v35 = vpop.f32.mrf.mxu2 }
 0x27e   : > { %943 = vst [vmem:[%s1502_s22 + $0x8] sm:$0xff] %v659_v35  ;;  %v679_v47 = vpop.f32.mrf.mxu3 }
 0x27f   : > { %944 = vst [vmem:[%s1502_s22 + $0x10] sm:$0xff] %v679_v47 }
 0x280   : > { %v699_v7 = vpop.f32.mrf.mxu1 }
 0x281   : > { %945 = vst [vmem:[%s1502_s22 + $0x18] sm:$0xff] %v699_v7 }
 0x286   : > { %v719_v48 = vpop.f32.mrf.mxu2 }
 0x287   : > { %946 = vst [vmem:[%s1502_s22 + $0x20] sm:$0xff] %v719_v48  ;;  %v739_v49 = vpop.f32.mrf.mxu3 }
 0x288   : > { %947 = vst [vmem:[%s1502_s22 + $0x28] sm:$0xff] %v739_v49 }
 0x28b   : > { %v759_v50 = vpop.f32.mrf.mxu1 }
 0x28c   : > { %948 = vst [vmem:[%s1502_s22 + $0x30] sm:$0xff] %v759_v50 }
 0x28f   : > { %v779_v52 = vpop.f32.mrf.mxu2 }
 0x290   : > { %949 = vst [vmem:[%s1502_s22 + $0x38] sm:$0xff] %v779_v52 }
 0x291   : > { %v799_v53 = vpop.f32.mrf.mxu3 }
 0x292   : > { %950 = vst [vmem:[%s1502_s22 + $0x40] sm:$0xff] %v799_v53 }
 0x299   : > { %v819_v54 = vpop.f32.mrf.mxu1 }
 0x29a   : > { %951 = vst [vmem:[%s1502_s22 + $0x48] sm:$0xff] %v819_v54 }
 0x2a0   : > { %v839_v55 = vpop.f32.mrf.mxu2  ;;  %v859_v57 = vpop.f32.mrf.mxu3 }
 0x2a1   : > { %952 = vst [vmem:[%s1502_s22 + $0x50] sm:$0xff] %v839_v55 }
 0x2a2   : > { %953 = vst [vmem:[%s1502_s22 + $0x58] sm:$0xff] %v859_v57 }
 0x2aa   : > { %v879_v58 = vpop.f32.mrf.mxu1 }
 0x2ab   : > { %954 = vst [vmem:[%s1502_s22 + $0x60] sm:$0xff] %v879_v58 }
 0x2b1   : > { %v899_v59 = vpop.f32.mrf.mxu2  ;;  %v919_v60 = vpop.f32.mrf.mxu3 }
 0x2b2   : > { %955 = vst [vmem:[%s1502_s22 + $0x68] sm:$0xff] %v899_v59 }
 0x2b3   : > { %956 = vst [vmem:[%s1502_s22 + $0x70] sm:$0xff] %v919_v60 }
 0x2b4   : > { %1235 = shalt.err (!%p1232_p8)
}
 0x2b5   : > { %1097 = dma.vmem_to_hbm [thread:$0]  (%p1342_p5), %s973_s30, 2048, %s975_s5, %s959_s6  }
 0x2b6 PF: > { %p1109_p9 = scmp.ge.s32.totalorder %s1274_s18, 2  ;;  %s986_s13 = sand.u32 1, %s1262_s15  }
 0x2b7   : > { %s987_s14 = scalar_lea.sflag [#allocation4], %s986_s13 }
 0x2b8   : > { %p1104_p10 = pnand %p1109_p9, %p1346_p6 }
 0x2ba   : > { %p1105_p11 = pneg %p1104_p10 }
 0x2bc   : > { %1257 = dma.done.wait (%p1105_p11), %s987_s14, 2048  }
 0x2bd   : > { %1259 = vsyncadd (%p1105_p11), %s987_s14, 4294965248  ;;  %p15_p12 = scmp.ge.s32.totalorder %s1329_s21, 4   ;;  %s1561_s15 = smov %s1266_s16 }
 0x2be   : > { %s1562_s16 = smov %s1270_s17  ;;  %s1563_s17 = smov %s1340_s24 }
 0x2bf   : > { %s1564_s18 = smov %s1329_s21  ;;  %17 = sbr.rel (!%p15_p12) target bundleno = 4 (0x4), region = 76 }
 0x2c4   :  { %993 = vsyncpa [#allocation3], 1 }
 0x2c5   :  { %995 = vsyncpa [#allocation3 + $0x1], 1 }
 0x2c6   :  { %996 = vsyncpa [#allocation4], 1 }
 0x2c7   :  { %998 = vsyncpa [#allocation4 + $0x1], 1 }

</bundles_post_ra>
